<compile_context>
chip_gen: v6e
topology: v6e:2x2x1
jax: 0.10.0
libtpu: 0.0.40
codegen_flags: <defaults>
</compile_context>

<pallas_src>
import jax
import jax.numpy as jnp
from jax.experimental import pallas as pl
from jax.experimental.pallas import tpu as pltpu

_LANES = 128                          # lane dim: multiple of 128 -> dense vst
_SUBLANES = 8
_TILE_ELEMS = _SUBLANES * _LANES      # 1024: minimum padding granularity
_MAX_BLOCK_ROWS = 8192                # (8192, 128) f32 tile = 4 MiB / buffer
_SMALL_N_FALLBACK = _TILE_ELEMS       # below this, plain jnp is cheaper
_VMEM_LIMIT_BYTES = 32 << 20          # 2 arrays x 2 buffers x 4 MiB = 16 MiB fits


def _linreg_kernel(w_ref, b_ref, x_ref, o_ref):
    # y = w * x + b ; scalar w/b read once from SMEM, implicit VPU broadcast.
    w = w_ref[0]
    b = b_ref[0]
    o_ref[...] = w * x_ref[...] + b


def regression_forward(x, w, b):
    """Pallas implementation of RegressionModel.forward: w * x + b.

    x: (N,) float32;  w: (1,) float32;  b: (1,) float32  ->  (N,) float32
    """
    n = x.shape[0]

    # Tiny inputs: skip the kernel entirely (launch/pad overhead dominates).
    if n < _SMALL_N_FALLBACK:
        return w[0] * x + b[0]

    # Pad only to 8x128 granularity; for already-aligned N this is a no-op and
    # the wrapper adds zero extra HBM traffic.
    n_pad = ((n + _TILE_ELEMS - 1) // _TILE_ELEMS) * _TILE_ELEMS
    xp = jnp.pad(x, (0, n_pad - n)) if n_pad != n else x

    rows = n_pad // _LANES                    # multiple of 8
    x2d = xp.reshape(rows, _LANES)            # contiguous reshape: free

    # Large tiles to amortize per-step overhead, but >= 2 grid steps whenever
    # possible so both v7x TensorCores get work.
    block_rows = min(_MAX_BLOCK_ROWS, rows)
    if rows > _SUBLANES:
        half_rows = (((rows + 1) // 2) + _SUBLANES - 1) // _SUBLANES * _SUBLANES
        block_rows = min(block_rows, half_rows)
    grid = (pl.cdiv(rows, block_rows),)       # ragged last block is fine

    itemsize = jnp.dtype(x.dtype).itemsize

    out = pl.pallas_call(
        _linreg_kernel,
        out_shape=jax.ShapeDtypeStruct((rows, _LANES), x.dtype),
        grid=grid,
        in_specs=[
            pl.BlockSpec(memory_space=pltpu.MemorySpace.SMEM),      # w scalar
            pl.BlockSpec(memory_space=pltpu.MemorySpace.SMEM),      # b scalar
            pl.BlockSpec((block_rows, _LANES), lambda i: (i, 0)),   # x tile
        ],
        out_specs=pl.BlockSpec((block_rows, _LANES), lambda i: (i, 0)),
        compiler_params=pltpu.CompilerParams(
            dimension_semantics=("parallel",),
            vmem_limit_bytes=_VMEM_LIMIT_BYTES,
        ),
        cost_estimate=pl.CostEstimate(
            flops=2 * n_pad,
            transcendentals=0,
            bytes_accessed=2 * itemsize * n_pad,
        ),
    )(w, b, x2d)

    out_flat = out.reshape(n_pad)
    return out_flat if n_pad == n else out_flat[:n]


if __name__ == "__main__":
    key = jax.random.PRNGKey(0)
    kw, kb, kx = jax.random.split(key, 3)

    # Deterministic parameter init mimicking torch.rand([1]) (uniform [0, 1)).
    w = jax.random.uniform(kw, (1,), dtype=jnp.float32)
    b = jax.random.uniform(kb, (1,), dtype=jnp.float32)

    # Module's example data (N = 9): tiny-input jnp fast path.
    x_small = jnp.array([1, 5, 10, 10, 25, 50, 70, 75, 100], dtype=jnp.float32)
    y_small = jax.block_until_ready(regression_forward(x_small, w, b))
    assert y_small.shape == x_small.shape
    assert jnp.allclose(y_small, w[0] * x_small + b[0], atol=1e-6)

    # Unaligned large N: pad-to-1024 + 2-step Pallas grid.
    x_big = jax.random.uniform(kx, (200_000,), dtype=jnp.float32) * 100.0
    y_big = jax.block_until_ready(regression_forward(x_big, w, b))
    assert y_big.shape == x_big.shape
    assert jnp.allclose(y_big, w[0] * x_big + b[0], atol=1e-5), "unaligned-N mismatch"

    # 1024-aligned N: zero-copy wrapper (no pad, no output slice).
    x_aligned = jax.random.uniform(kx, (262_144,), dtype=jnp.float32) * 100.0
    y_aligned = jax.block_until_ready(regression_forward(x_aligned, w, b))
    assert y_aligned.shape == x_aligned.shape
    assert jnp.allclose(y_aligned, w[0] * x_aligned + b[0], atol=1e-5), "aligned-N mismatch"

    # Size whose row count does not split evenly -> ragged last block,
    # exercising masked edge stores.
    x_ragged = jax.random.uniform(kx, (300_000,), dtype=jnp.float32) * 100.0
    y_ragged = jax.block_until_ready(regression_forward(x_ragged, w, b))
    assert y_ragged.shape == x_ragged.shape
    assert jnp.allclose(y_ragged, w[0] * x_ragged + b[0], atol=1e-5), "ragged-block mismatch"

    print("KERNEL_OK")
</pallas_src>

<mosaic_0001>
module attributes {stable_mosaic.version = 11 : i64} {
  func.func @_linreg_kernel(%arg0: i32, %arg1: memref<1xf32, #tpu.memory_space<smem>>, %arg2: memref<1xf32, #tpu.memory_space<smem>>, %arg3: memref<784x128xf32, #tpu.memory_space<vmem>>, %arg4: memref<784x128xf32, #tpu.memory_space<vmem>>) attributes {dimension_semantics = [#tpu.dimension_semantics<parallel>], iteration_bounds = array<i64: 2>, scalar_prefetch = 0 : i64, scratch_operands = 0 : i64, tpu.core_type = #tpu.core_type<tc>, window_params = [{transform_indices = @transform_0, window_bounds = array<i64: 1>}, {transform_indices = @transform_1, window_bounds = array<i64: 1>}, {transform_indices = @transform_2, window_bounds = array<i64: 784, 128>}, {transform_indices = @transform_3, window_bounds = array<i64: 784, 128>}]} {
    %c0 = arith.constant 0 : index
    %0 = memref.load %arg1[%c0] : memref<1xf32, #tpu.memory_space<smem>>
    %c0_0 = arith.constant 0 : index
    %1 = memref.load %arg2[%c0_0] : memref<1xf32, #tpu.memory_space<smem>>
    %c0_1 = arith.constant 0 : index
    %c0_2 = arith.constant 0 : index
    %2 = vector.load %arg3[%c0_1, %c0_2] : memref<784x128xf32, #tpu.memory_space<vmem>>, vector<784x128xf32>
    %3 = vector.broadcast %0 : f32 to vector<784x128xf32>
    %4 = arith.mulf %3, %2 : vector<784x128xf32>
    %5 = vector.broadcast %1 : f32 to vector<784x128xf32>
    %6 = arith.addf %4, %5 : vector<784x128xf32>
    %c0_3 = arith.constant 0 : index
    %c0_4 = arith.constant 0 : index
    %7 = vector.load %arg4[%c0_3, %c0_4] : memref<784x128xf32, #tpu.memory_space<vmem>>, vector<784x128xf32>
    tpu.vector_store %arg4[%c0_3, %c0_4], %6 {strides = array<i32>} : memref<784x128xf32, #tpu.memory_space<vmem>>, vector<784x128xf32>,
    return
  }
  func.func @transform_0(%arg0: i32) -> i32 {
    %c0_i32 = arith.constant 0 : i32
    %c0_i32_0 = arith.constant 0 : i32
    return %c0_i32 : i32
  }
  func.func @transform_1(%arg0: i32) -> i32 {
    %c0_i32 = arith.constant 0 : i32
    %c0_i32_0 = arith.constant 0 : i32
    return %c0_i32 : i32
  }
  func.func @transform_2(%arg0: i32) -> (i32, i32) {
    %c0_i32 = arith.constant 0 : i32
    %c0_i32_0 = arith.constant 0 : i32
    return %arg0, %c0_i32 : i32, i32
  }
  func.func @transform_3(%arg0: i32) -> (i32, i32) {
    %c0_i32 = arith.constant 0 : i32
    %c0_i32_0 = arith.constant 0 : i32
    return %arg0, %c0_i32 : i32, i32
  }
}

</mosaic_0001>

<bundles_post_ra>
// kernel: tpu_custom_call.1
= control target key start
LH: loop header
LB: loop body
LE: loop exit
PB: predicated region body
PF: predicated region fallthrough
CT: control target
= control target key end

     0   :  { %s1417_s0 = inlined_call_operand.<no memory space> [shape: f32[1], index: 0, kind: input, shape index: {}]   ;;  %s1418_s1 = inlined_call_operand.<no memory space> [shape: f32[1], index: 1, kind: input, shape index: {}]   ;;  %s1419_s2 = inlined_call_operand.hbm [shape: f32[1568,128], index: 2, kind: input, shape index: {}]   ;;  %s1420_s3 = inlined_call_operand.hbm [shape: f32[1568,128], index: 3, kind: output, shape index: {}]  }
   0x1   :  { %8 = sst [smem:[#allocation2]] %s1417_s0 }
   0x2   :  { %9 = sst [smem:[#allocation3]] %s1418_s1 }
   0x3   :  { %10 = vsyncpa [#allocation5], 0 }
   0x4   :  { %12 = vsyncpa [#allocation5 + $0x1], 0 }
   0x5   :  { %13 = vsyncpa [#allocation6], 0 }
   0x6   :  { %15 = vsyncpa [#allocation6 + $0x1], 0  ;;  %s864_s16 = smov 0   ;;  %s866_s17 = smov 0  }
   0x7   :  { %s868_s18 = smov 0   ;;  %s870_s19 = smov 0  }
   0x8 LB: > { %s885_s0 = sadd.s32 4294967295, %s830_s19   ;;  %s676_s1 = sadd.s32 4294967294, %s830_s19   ;;  %s830_s19 = sphi %s870_s19, %s1434_s19   ;;  %s826_s18 = sphi %s868_s18, %s1433_s18   ;;  %s822_s17 = sphi %s866_s17, %s1432_s17   ;;  %s818_s16 = sphi %s864_s16, %s1431_s16  }
   0x9   : > { %s889_s20 = sadd.s32 1, %s830_s19   ;;  %s70_s21 = sadd.s32 1, %s826_s18 }
   0xa   : > { %s67_s22 = ssub.s32 %s830_s19, %s889_s20  ;;  %p77_p0 = scmp.ne.s32.totalorder %s826_s18, %s822_s17 }
   0xb   : > { %p68_p1 = scmp.eq.s32.totalorder %s67_s22, 0  ;;  %p78_p2 = scmp.eq.s32.totalorder %s830_s19, 0 }
   0xc   : > { %p83_p3 = scmp.ne.s32.totalorder %s822_s17, %s818_s16  ;;  %p84_p4 = scmp.eq.s32.totalorder %s885_s0, 0 }
   0xd   : > { %s901_s23 = scalar_select %p68_p1, %s826_s18, %s70_s21  }
   0xe   : > { %p79_p5 = por %p78_p2, %p77_p0  ;;  %p903_p6 = por %p84_p4, %p83_p3 }
   0xf   : > { %p107_p7 = scmp.eq.s32.totalorder %s885_s0, 1  ;;  %p113_p8 = scmp.eq.s32.totalorder %s676_s1, 1 }
  0x10   : > { %s1423_s24 = scalar_select %p903_p6, 1, 0 }
  0x11   : > { %p700_p10 = scmp.lt.s32.totalorder %s830_s19, 2  ;;  %p910_p11 = por %p107_p7, %p77_p0 }
  0x12   : > { %p914_p12 = por %p113_p8, %p83_p3  ;;  %s139_s27 = sand.u32 1, %s826_s18  }
  0x13   : > { %s1424_s25 = scalar_select %p910_p11, 1, 0 }
  0x14   : > { %s1425_s26 = scalar_select %p914_p12, 1, 0 }
  0x15   : > { %s684_s28 = smul.u32 12544, %s830_s19  ;;  %p925_p13 = pnand %p700_p10, %p79_p5 }
  0x16   : > { %s686_s29 = smul.u32 784, %s139_s27  ;;  %s931_s9 = scalar_lea.sflag [#allocation5], %s139_s27 }
  0x17   : > { %s923_s5 = scalar_lea.hbm %s1419_s2, %s684_s28  ;;  %p740_p1 = pneg %p925_p13 }
  0x18   : > { %s143_s7 = scalar_lea.vmem [#allocation4], %s686_s29  ;;  %s738_s10 = scalar_lea.hbm %s923_s5, 12544 }
  0x19   : > { %s150_s8 = sshll.u32 %s143_s7, 4  ;;  %p739_p0 = scmp.ne.s32.totalorder %s923_s5, %s738_s10  ;;  %s929_s8 = int_to_ptr.vmem [resolvable:$true] %s150_s8 }
  0x1a   : > { %s743_s13 = scalar_lea.hbm %s1419_s2, 25088  ;;  %p744_p4 = scmp.lt.s32.totalorder %s923_s5, %s1419_s2 }
  0x1b   : > { %p741_p2 = pnand %p740_p1, %p739_p0  ;;  %p745_p5 = scmp.lt.s32.totalorder %s743_s13, %s738_s10 }
  0x1d   : > { %p742_p3 = pneg %p741_p2  ;;  %p746_p7 = por %p745_p5, %p744_p4 }
  0x1f   : > { %p747_p8 = pnand %p746_p7, %p742_p3 }
  0x21   : > { %750 = shalt.err (!%p747_p8)
}
  0x22   : > { %s751_s1 = scalar_lea.vmem %s929_s8, 12544  ;;  %s832_s21 = smov [#allocation4]  }
  0x23   : > { %p752_p10 = scmp.ne.s32.totalorder %s929_s8, %s751_s1  ;;  %s756_s22 = sshll.u32 %s832_s21, 4  ;;  %s757_s22 = int_to_ptr.vmem [resolvable:$false] %s756_s22 }
  0x24   : > { %s758_s27 = scalar_lea.vmem %s757_s22, 25088  ;;  %p759_p2 = scmp.lt.s32.totalorder %s929_s8, %s757_s22 }
  0x25   : > { %p754_p9 = pnand %p752_p10, %p740_p1  ;;  %p760_p12 = scmp.lt.s32.totalorder %s758_s27, %s751_s1 }
  0x27   : > { %p755_p0 = pneg %p754_p9  ;;  %p761_p11 = por %p760_p12, %p759_p2 }
  0x29   : > { %p762_p6 = pnand %p761_p11, %p755_p0 }
  0x2b   : > { %765 = shalt.err (!%p762_p6)
}
  0x2c   : > { %s833_s28 = smov 128   ;;  %s834_s29 = smov 8  }
  0x2d   : > { %695 = dma.hbm_to_vmem [thread:$0]  (!%p925_p13), %s923_s5, 12544, %s929_s8, %s931_s9, %s833_s28, %s833_s28, %s834_s29  }
  0x2e   : > { %p680_p9 = scmp.ge.s32.totalorder %s830_s19, 1  ;;  %p158_p1 = scmp.lt.s32.totalorder %s830_s19, 3 }
  0x30   : > { %p159_p3 = pnand %p680_p9, %p158_p1 }
  0x31   : > { %s955_s30 = sand.u32 (!%p159_p3), 1, %s822_s17   ;;  %p1427_p6 = scmp.ne.s32.totalorder (!%p159_p3), %s1423_s24, 0 }
  0x32   : > { %162 = sbr.rel (%p159_p3) target bundleno = 138 (0x8a), region = 32  ;;  %s165_s7 = scalar_lea.sflag (!%p159_p3), [#allocation5], %s955_s30 }
  0x33   : > { %s687_s4 = smul.u32 (!%p159_p3), 784, %s955_s30 }
  0x35   : > { %s961_s10 = scalar_lea.vmem (!%p159_p3), [#allocation4], %s687_s4 }
  0x37   : > { %809 = dma.done.wait (%p1427_p6), %s165_s7, 12544  }
  0x38   : > { %811 = vsyncadd (%p1427_p6), %s165_s7, 4294954752  ;;  %s193_s5 = sld [smem:[#allocation2]]  ;;  %v195_v0 = vld [vmem:[%s961_s10] sm:$0xff]  ;;  %v196_v2 = vld [vmem:[%s961_s10 + $0x8] sm:$0xff]  ;;  %s1002_s24 = scalar_lea.vmem [#allocation7], %s687_s4 }
  0x39   : > { %s194_s6 = sld [smem:[#allocation3]]  ;;  %v197_v3 = vld [vmem:[%s961_s10 + $0x10] sm:$0xff]  ;;  %v198_v8 = vld [vmem:[%s961_s10 + $0x18] sm:$0xff]  ;;  %v199_v9 = vld [vmem:[%s961_s10 + $0x20] sm:$0xff]  ;;  %s685_s8 = smul.u32 12544, %s885_s0 }
  0x3a   : > { %v200_v10 = vld [vmem:[%s961_s10 + $0x28] sm:$0xff]  ;;  %v201_v14 = vld [vmem:[%s961_s10 + $0x30] sm:$0xff]  ;;  %v202_v15 = vld [vmem:[%s961_s10 + $0x38] sm:$0xff]  ;;  %s603_s9 = sshll.u32 %s1002_s24, 4  ;;  %s590_s13 = scalar_lea.sflag [#allocation6], %s955_s30  ;;  %s1368_s9 = int_to_ptr.vmem [resolvable:$true] %s603_s9 }
  0x3b   : > { %v203_v16 = vld [vmem:[%s961_s10 + $0x40] sm:$0xff]  ;;  %v204_v21 = vld [vmem:[%s961_s10 + $0x48] sm:$0xff]  ;;  %v205_v22 = vld [vmem:[%s961_s10 + $0x50] sm:$0xff]  ;;  %s1366_s12 = scalar_lea.hbm %s1420_s3, %s685_s8  ;;  %s766_s14 = scalar_lea.vmem %s1368_s9, 12544 }
  0x3c   : > { %v206_v23 = vld [vmem:[%s961_s10 + $0x58] sm:$0xff]  ;;  %v207_v28 = vld [vmem:[%s961_s10 + $0x60] sm:$0xff]  ;;  %v208_v29 = vld [vmem:[%s961_s10 + $0x68] sm:$0xff]  ;;  %p767_p11 = scmp.ne.s32.totalorder %s1368_s9, %s766_s14  ;;  %p1428_p12 = scmp.ne.s32.totalorder %s1424_s25, 0 }
  0x3d   : > { %v209_v30 = vld [vmem:[%s961_s10 + $0x70] sm:$0xff]  ;;  %v210_v35 = vld [vmem:[%s961_s10 + $0x78] sm:$0xff]  ;;  %v211_v40 = vld [vmem:[%s961_s10 + $0x80] sm:$0xff]  ;;  %s835_s15 = smov [#allocation7]  }
  0x3e   : > { %v968_v1 = vstv %s193_s5  ;;  %v212_v41 = vld [vmem:[%s961_s10 + $0x88] sm:$0xff]  ;;  %v213_v42 = vld [vmem:[%s961_s10 + $0x90] sm:$0xff]  ;;  %v214_v47 = vld [vmem:[%s961_s10 + $0x98] sm:$0xff]  ;;  %p768_p13 = pnand %p767_p11, %p1428_p12  ;;  %s770_s1 = sshll.u32 %s835_s15, 4  ;;  %s771_s1 = int_to_ptr.vmem [resolvable:$false] %s770_s1 }
  0x3f   : > { %v294_v4 = vmul.f32 %v968_v1, %v195_v0  ;;  %v973_v5 = vstv %s194_s6  ;;  %v295_v6 = vmul.f32 %v968_v1, %v196_v2  ;;  %v296_v7 = vmul.f32 %v968_v1, %v197_v3  ;;  %v215_v48 = vld [vmem:[%s961_s10 + $0xa0] sm:$0xff]  ;;  %v216_v49 = vld [vmem:[%s961_s10 + $0xa8] sm:$0xff]  ;;  %v217_v54 = vld [vmem:[%s961_s10 + $0xb0] sm:$0xff]  ;;  %s772_s21 = scalar_lea.vmem %s771_s1, 25088  ;;  %p773_p5 = scmp.lt.s32.totalorder %s1368_s9, %s771_s1 }
  0x40   : > { %v297_v11 = vmul.f32 %v968_v1, %v198_v8  ;;  %v298_v12 = vmul.f32 %v968_v1, %v199_v9  ;;  %v299_v13 = vmul.f32 %v968_v1, %v200_v10  ;;  %v300_v20 = vmul.f32 %v968_v1, %v201_v14  ;;  %v218_v59 = vld [vmem:[%s961_s10 + $0xb8] sm:$0xff]  ;;  %v219_v0 = vld [vmem:[%s961_s10 + $0xc0] sm:$0xff]  ;;  %v220_v2 = vld [vmem:[%s961_s10 + $0xc8] sm:$0xff]  ;;  %p769_p4 = pneg %p768_p13  ;;  %p774_p7 = scmp.lt.s32.totalorder %s772_s21, %s766_s14 }
  0x41   : > { %v393_v17 = vadd.f32 %v973_v5, %v294_v4  ;;  %v394_v18 = vadd.f32 %v973_v5, %v295_v6  ;;  %v395_v19 = vadd.f32 %v973_v5, %v296_v7  ;;  %v301_v27 = vmul.f32 %v968_v1, %v202_v15  ;;  %v221_v3 = vld [vmem:[%s961_s10 + $0xd0] sm:$0xff]  ;;  %v222_v9 = vld [vmem:[%s961_s10 + $0xd8] sm:$0xff]  ;;  %v223_v10 = vld [vmem:[%s961_s10 + $0xe0] sm:$0xff] }
  0x42   : > { %v396_v24 = vadd.f32 %v973_v5, %v297_v11  ;;  %v397_v25 = vadd.f32 %v973_v5, %v298_v12  ;;  %v398_v26 = vadd.f32 %v973_v5, %v299_v13  ;;  %v399_v31 = vadd.f32 %v973_v5, %v300_v20  ;;  %v224_v11 = vld [vmem:[%s961_s10 + $0xe8] sm:$0xff]  ;;  %p775_p8 = por %p774_p7, %p773_p5 }
  0x43   : > { %491 = vst [vmem:[%s1002_s24] sm:$0xff] %v393_v17  ;;  %492 = vst [vmem:[%s1002_s24 + $0x8] sm:$0xff] %v394_v18  ;;  %v302_v32 = vmul.f32 %v968_v1, %v203_v16  ;;  %v303_v33 = vmul.f32 %v968_v1, %v204_v21  ;;  %v304_v34 = vmul.f32 %v968_v1, %v205_v22  ;;  %v225_v16 = vld [vmem:[%s961_s10 + $0xf0] sm:$0xff]  ;;  %v226_v21 = vld [vmem:[%s961_s10 + $0xf8] sm:$0xff] }
  0x44   : > { %493 = vst [vmem:[%s1002_s24 + $0x10] sm:$0xff] %v395_v19  ;;  %494 = vst [vmem:[%s1002_s24 + $0x18] sm:$0xff] %v396_v24  ;;  %v400_v36 = vadd.f32 %v973_v5, %v301_v27  ;;  %v305_v37 = vmul.f32 %v968_v1, %v206_v23  ;;  %v306_v38 = vmul.f32 %v968_v1, %v207_v28  ;;  %v228_v27 = vld [vmem:[%s961_s10 + $0x108] sm:$0xff]  ;;  %v229_v28 = vld [vmem:[%s961_s10 + $0x110] sm:$0xff]  ;;  %p776_p10 = pnand %p775_p8, %p769_p4 }
  0x45   : > { %495 = vst [vmem:[%s1002_s24 + $0x20] sm:$0xff] %v397_v25  ;;  %496 = vst [vmem:[%s1002_s24 + $0x28] sm:$0xff] %v398_v26  ;;  %v307_v39 = vmul.f32 %v968_v1, %v208_v29  ;;  %v401_v43 = vadd.f32 %v973_v5, %v302_v32  ;;  %v402_v44 = vadd.f32 %v973_v5, %v303_v33  ;;  %v227_v26 = vld [vmem:[%s961_s10 + $0x100] sm:$0xff]  ;;  %v230_v33 = vld [vmem:[%s961_s10 + $0x118] sm:$0xff] }
  0x46   : > { %497 = vst [vmem:[%s1002_s24 + $0x30] sm:$0xff] %v399_v31  ;;  %v403_v45 = vadd.f32 %v973_v5, %v304_v34  ;;  %v308_v46 = vmul.f32 %v968_v1, %v209_v30  ;;  %498 = vst [vmem:[%s1002_s24 + $0x38] sm:$0xff] %v400_v36  ;;  %v404_v50 = vadd.f32 %v973_v5, %v305_v37  ;;  %v231_v34 = vld [vmem:[%s961_s10 + $0x120] sm:$0xff] }
  0x47   : > { %v405_v51 = vadd.f32 %v973_v5, %v306_v38  ;;  %v406_v52 = vadd.f32 %v973_v5, %v307_v39  ;;  %v309_v53 = vmul.f32 %v968_v1, %v210_v35  ;;  %499 = vst [vmem:[%s1002_s24 + $0x40] sm:$0xff] %v401_v43  ;;  %500 = vst [vmem:[%s1002_s24 + $0x48] sm:$0xff] %v402_v44  ;;  %v232_v35 = vld [vmem:[%s961_s10 + $0x128] sm:$0xff] }
  0x48   : > { %501 = vst [vmem:[%s1002_s24 + $0x50] sm:$0xff] %v403_v45  ;;  %v407_v55 = vadd.f32 %v973_v5, %v308_v46  ;;  %v310_v56 = vmul.f32 %v968_v1, %v211_v40  ;;  %v311_v57 = vmul.f32 %v968_v1, %v212_v41  ;;  %v312_v58 = vmul.f32 %v968_v1, %v213_v42  ;;  %v233_v40 = vld [vmem:[%s961_s10 + $0x130] sm:$0xff]  ;;  %v234_v45 = vld [vmem:[%s961_s10 + $0x138] sm:$0xff] }
  0x49   : > { %502 = vst [vmem:[%s1002_s24 + $0x58] sm:$0xff] %v404_v50  ;;  %503 = vst [vmem:[%s1002_s24 + $0x60] sm:$0xff] %v405_v51  ;;  %v408_v60 = vadd.f32 %v973_v5, %v309_v53  ;;  %v313_v61 = vmul.f32 %v968_v1, %v214_v47  ;;  %v314_v62 = vmul.f32 %v968_v1, %v215_v48  ;;  %v235_v50 = vld [vmem:[%s961_s10 + $0x140] sm:$0xff]  ;;  %v236_v51 = vld [vmem:[%s961_s10 + $0x148] sm:$0xff] }
  0x4a   : > { %504 = vst [vmem:[%s1002_s24 + $0x68] sm:$0xff] %v406_v52  ;;  %v315_v63 = vmul.f32 %v968_v1, %v216_v49  ;;  %505 = vst [vmem:[%s1002_s24 + $0x70] sm:$0xff] %v407_v55  ;;  %v409_v4 = vadd.f32 %v973_v5, %v310_v56  ;;  %v410_v6 = vadd.f32 %v973_v5, %v311_v57  ;;  %v237_v52 = vld [vmem:[%s961_s10 + $0x150] sm:$0xff]  ;;  %v238_v57 = vld [vmem:[%s961_s10 + $0x158] sm:$0xff] }
  0x4b   : > { %v411_v7 = vadd.f32 %v973_v5, %v312_v58  ;;  %v316_v8 = vmul.f32 %v968_v1, %v217_v54  ;;  %506 = vst [vmem:[%s1002_s24 + $0x78] sm:$0xff] %v408_v60  ;;  %v412_v12 = vadd.f32 %v973_v5, %v313_v61  ;;  %v413_v13 = vadd.f32 %v973_v5, %v314_v62  ;;  %v239_v58 = vld [vmem:[%s961_s10 + $0x160] sm:$0xff] }
  0x4c   : > { %v414_v14 = vadd.f32 %v973_v5, %v315_v63  ;;  %v317_v15 = vmul.f32 %v968_v1, %v218_v59  ;;  %507 = vst [vmem:[%s1002_s24 + $0x80] sm:$0xff] %v409_v4  ;;  %508 = vst [vmem:[%s1002_s24 + $0x88] sm:$0xff] %v410_v6  ;;  %v318_v18 = vmul.f32 %v968_v1, %v219_v0  ;;  %v240_v59 = vld [vmem:[%s961_s10 + $0x168] sm:$0xff]  ;;  %v241_v0 = vld [vmem:[%s961_s10 + $0x170] sm:$0xff] }
  0x4d   : > { %509 = vst [vmem:[%s1002_s24 + $0x90] sm:$0xff] %v411_v7  ;;  %v415_v17 = vadd.f32 %v973_v5, %v316_v8  ;;  %v319_v19 = vmul.f32 %v968_v1, %v220_v2  ;;  %v320_v20 = vmul.f32 %v968_v1, %v221_v3  ;;  %510 = vst [vmem:[%s1002_s24 + $0x98] sm:$0xff] %v412_v12  ;;  %v242_v7 = vld [vmem:[%s961_s10 + $0x178] sm:$0xff]  ;;  %v243_v12 = vld [vmem:[%s961_s10 + $0x180] sm:$0xff] }
  0x4e   : > { %511 = vst [vmem:[%s1002_s24 + $0xa0] sm:$0xff] %v413_v13  ;;  %512 = vst [vmem:[%s1002_s24 + $0xa8] sm:$0xff] %v414_v14  ;;  %v416_v22 = vadd.f32 %v973_v5, %v317_v15  ;;  %v321_v23 = vmul.f32 %v968_v1, %v222_v9  ;;  %v322_v24 = vmul.f32 %v968_v1, %v223_v10  ;;  %v244_v13 = vld [vmem:[%s961_s10 + $0x188] sm:$0xff]  ;;  %v245_v14 = vld [vmem:[%s961_s10 + $0x190] sm:$0xff] }
  0x4f   : > { %v323_v25 = vmul.f32 %v968_v1, %v224_v11  ;;  %513 = vst [vmem:[%s1002_s24 + $0xb0] sm:$0xff] %v415_v17  ;;  %v417_v29 = vadd.f32 %v973_v5, %v318_v18  ;;  %v418_v30 = vadd.f32 %v973_v5, %v319_v19  ;;  %v419_v31 = vadd.f32 %v973_v5, %v320_v20  ;;  %v246_v19 = vld [vmem:[%s961_s10 + $0x198] sm:$0xff]  ;;  %v247_v20 = vld [vmem:[%s961_s10 + $0x1a0] sm:$0xff] }
  0x50   : > { %v324_v32 = vmul.f32 %v968_v1, %v225_v16  ;;  %514 = vst [vmem:[%s1002_s24 + $0xb8] sm:$0xff] %v416_v22  ;;  %v420_v36 = vadd.f32 %v973_v5, %v321_v23  ;;  %v421_v37 = vadd.f32 %v973_v5, %v322_v24  ;;  %v325_v39 = vmul.f32 %v968_v1, %v226_v21  ;;  %v248_v21 = vld [vmem:[%s961_s10 + $0x1a8] sm:$0xff] }
  0x51   : > { %v422_v38 = vadd.f32 %v973_v5, %v323_v25  ;;  %515 = vst [vmem:[%s1002_s24 + $0xc0] sm:$0xff] %v417_v29  ;;  %516 = vst [vmem:[%s1002_s24 + $0xc8] sm:$0xff] %v418_v30  ;;  %v326_v42 = vmul.f32 %v968_v1, %v227_v26  ;;  %v327_v43 = vmul.f32 %v968_v1, %v228_v27  ;;  %v249_v26 = vld [vmem:[%s961_s10 + $0x1b0] sm:$0xff] }
  0x52   : > { %517 = vst [vmem:[%s1002_s24 + $0xd0] sm:$0xff] %v419_v31  ;;  %v423_v41 = vadd.f32 %v973_v5, %v324_v32  ;;  %v328_v44 = vmul.f32 %v968_v1, %v229_v28  ;;  %518 = vst [vmem:[%s1002_s24 + $0xd8] sm:$0xff] %v420_v36  ;;  %v424_v46 = vadd.f32 %v973_v5, %v325_v39  ;;  %v250_v31 = vld [vmem:[%s961_s10 + $0x1b8] sm:$0xff]  ;;  %v251_v36 = vld [vmem:[%s961_s10 + $0x1c0] sm:$0xff] }
  0x53   : > { %519 = vst [vmem:[%s1002_s24 + $0xe0] sm:$0xff] %v421_v37  ;;  %520 = vst [vmem:[%s1002_s24 + $0xe8] sm:$0xff] %v422_v38  ;;  %v329_v47 = vmul.f32 %v968_v1, %v230_v33  ;;  %v330_v48 = vmul.f32 %v968_v1, %v231_v34  ;;  %v331_v49 = vmul.f32 %v968_v1, %v232_v35  ;;  %v252_v37 = vld [vmem:[%s961_s10 + $0x1c8] sm:$0xff]  ;;  %v253_v38 = vld [vmem:[%s961_s10 + $0x1d0] sm:$0xff] }
  0x54   : > { %521 = vst [vmem:[%s1002_s24 + $0xf0] sm:$0xff] %v423_v41  ;;  %v425_v53 = vadd.f32 %v973_v5, %v326_v42  ;;  %v426_v54 = vadd.f32 %v973_v5, %v327_v43  ;;  %v427_v55 = vadd.f32 %v973_v5, %v328_v44  ;;  %v332_v56 = vmul.f32 %v968_v1, %v233_v40  ;;  %v254_v43 = vld [vmem:[%s961_s10 + $0x1d8] sm:$0xff]  ;;  %v255_v44 = vld [vmem:[%s961_s10 + $0x1e0] sm:$0xff] }
  0x55   : > { %522 = vst [vmem:[%s1002_s24 + $0xf8] sm:$0xff] %v424_v46  ;;  %v428_v60 = vadd.f32 %v973_v5, %v329_v47  ;;  %v429_v61 = vadd.f32 %v973_v5, %v330_v48  ;;  %v430_v62 = vadd.f32 %v973_v5, %v331_v49  ;;  %v333_v63 = vmul.f32 %v968_v1, %v234_v45  ;;  %v256_v45 = vld [vmem:[%s961_s10 + $0x1e8] sm:$0xff] }
  0x56   : > { %523 = vst [vmem:[%s1002_s24 + $0x100] sm:$0xff] %v425_v53  ;;  %524 = vst [vmem:[%s1002_s24 + $0x108] sm:$0xff] %v426_v54  ;;  %v431_v2 = vadd.f32 %v973_v5, %v332_v56  ;;  %v334_v3 = vmul.f32 %v968_v1, %v235_v50  ;;  %v335_v4 = vmul.f32 %v968_v1, %v236_v51  ;;  %v257_v50 = vld [vmem:[%s961_s10 + $0x1f0] sm:$0xff] }
  0x57   : > { %525 = vst [vmem:[%s1002_s24 + $0x110] sm:$0xff] %v427_v55  ;;  %v336_v6 = vmul.f32 %v968_v1, %v237_v52  ;;  %526 = vst [vmem:[%s1002_s24 + $0x118] sm:$0xff] %v428_v60  ;;  %v432_v8 = vadd.f32 %v973_v5, %v333_v63  ;;  %v337_v9 = vmul.f32 %v968_v1, %v238_v57  ;;  %v258_v55 = vld [vmem:[%s961_s10 + $0x1f8] sm:$0xff]  ;;  %v259_v60 = vld [vmem:[%s961_s10 + $0x200] sm:$0xff] }
  0x58   : > { %527 = vst [vmem:[%s1002_s24 + $0x120] sm:$0xff] %v429_v61  ;;  %528 = vst [vmem:[%s1002_s24 + $0x128] sm:$0xff] %v430_v62  ;;  %v338_v10 = vmul.f32 %v968_v1, %v239_v58  ;;  %v339_v11 = vmul.f32 %v968_v1, %v240_v59  ;;  %v433_v15 = vadd.f32 %v973_v5, %v334_v3  ;;  %v260_v61 = vld [vmem:[%s961_s10 + $0x208] sm:$0xff]  ;;  %v261_v62 = vld [vmem:[%s961_s10 + $0x210] sm:$0xff] }
  0x59   : > { %529 = vst [vmem:[%s1002_s24 + $0x130] sm:$0xff] %v431_v2  ;;  %v434_v16 = vadd.f32 %v973_v5, %v335_v4  ;;  %v435_v17 = vadd.f32 %v973_v5, %v336_v6  ;;  %v340_v18 = vmul.f32 %v968_v1, %v241_v0  ;;  %530 = vst [vmem:[%s1002_s24 + $0x138] sm:$0xff] %v432_v8  ;;  %v262_v4 = vld [vmem:[%s961_s10 + $0x218] sm:$0xff]  ;;  %v263_v6 = vld [vmem:[%s961_s10 + $0x220] sm:$0xff] }
  0x5a   : > { %v436_v22 = vadd.f32 %v973_v5, %v337_v9  ;;  %v437_v23 = vadd.f32 %v973_v5, %v338_v10  ;;  %v438_v24 = vadd.f32 %v973_v5, %v339_v11  ;;  %v341_v25 = vmul.f32 %v968_v1, %v242_v7  ;;  %531 = vst [vmem:[%s1002_s24 + $0x140] sm:$0xff] %v433_v15  ;;  %v264_v7 = vld [vmem:[%s961_s10 + $0x228] sm:$0xff] }
  0x5b   : > { %532 = vst [vmem:[%s1002_s24 + $0x148] sm:$0xff] %v434_v16  ;;  %533 = vst [vmem:[%s1002_s24 + $0x150] sm:$0xff] %v435_v17  ;;  %v439_v27 = vadd.f32 %v973_v5, %v340_v18  ;;  %v342_v28 = vmul.f32 %v968_v1, %v243_v12  ;;  %v343_v29 = vmul.f32 %v968_v1, %v244_v13  ;;  %v265_v12 = vld [vmem:[%s961_s10 + $0x230] sm:$0xff]  ;;  %v266_v17 = vld [vmem:[%s961_s10 + $0x238] sm:$0xff] }
  0x5c   : > { %v344_v30 = vmul.f32 %v968_v1, %v245_v14  ;;  %534 = vst [vmem:[%s1002_s24 + $0x158] sm:$0xff] %v436_v22  ;;  %535 = vst [vmem:[%s1002_s24 + $0x160] sm:$0xff] %v437_v23  ;;  %v440_v32 = vadd.f32 %v973_v5, %v341_v25  ;;  %v345_v33 = vmul.f32 %v968_v1, %v246_v19  ;;  %v267_v22 = vld [vmem:[%s961_s10 + $0x240] sm:$0xff]  ;;  %v268_v23 = vld [vmem:[%s961_s10 + $0x248] sm:$0xff] }
  0x5d   : > { %536 = vst [vmem:[%s1002_s24 + $0x168] sm:$0xff] %v438_v24  ;;  %v346_v34 = vmul.f32 %v968_v1, %v247_v20  ;;  %v347_v35 = vmul.f32 %v968_v1, %v248_v21  ;;  %537 = vst [vmem:[%s1002_s24 + $0x170] sm:$0xff] %v439_v27  ;;  %v441_v39 = vadd.f32 %v973_v5, %v342_v28  ;;  %v269_v24 = vld [vmem:[%s961_s10 + $0x250] sm:$0xff] }
  0x5e   : > { %v442_v40 = vadd.f32 %v973_v5, %v343_v29  ;;  %v443_v41 = vadd.f32 %v973_v5, %v344_v30  ;;  %v348_v42 = vmul.f32 %v968_v1, %v249_v26  ;;  %538 = vst [vmem:[%s1002_s24 + $0x178] sm:$0xff] %v440_v32  ;;  %v444_v46 = vadd.f32 %v973_v5, %v345_v33  ;;  %v270_v29 = vld [vmem:[%s961_s10 + $0x258] sm:$0xff]  ;;  %v271_v30 = vld [vmem:[%s961_s10 + $0x260] sm:$0xff] }
  0x5f   : > { %v445_v47 = vadd.f32 %v973_v5, %v346_v34  ;;  %v446_v48 = vadd.f32 %v973_v5, %v347_v35  ;;  %v349_v49 = vmul.f32 %v968_v1, %v250_v31  ;;  %539 = vst [vmem:[%s1002_s24 + $0x180] sm:$0xff] %v441_v39  ;;  %v350_v52 = vmul.f32 %v968_v1, %v251_v36  ;;  %v272_v31 = vld [vmem:[%s961_s10 + $0x268] sm:$0xff]  ;;  %v273_v36 = vld [vmem:[%s961_s10 + $0x270] sm:$0xff] }
  0x60   : > { %540 = vst [vmem:[%s1002_s24 + $0x188] sm:$0xff] %v442_v40  ;;  %541 = vst [vmem:[%s1002_s24 + $0x190] sm:$0xff] %v443_v41  ;;  %v447_v51 = vadd.f32 %v973_v5, %v348_v42  ;;  %v351_v53 = vmul.f32 %v968_v1, %v252_v37  ;;  %v352_v54 = vmul.f32 %v968_v1, %v253_v38  ;;  %v274_v41 = vld [vmem:[%s961_s10 + $0x278] sm:$0xff] }
  0x61   : > { %542 = vst [vmem:[%s1002_s24 + $0x198] sm:$0xff] %v444_v46  ;;  %543 = vst [vmem:[%s1002_s24 + $0x1a0] sm:$0xff] %v445_v47  ;;  %v448_v56 = vadd.f32 %v973_v5, %v349_v49  ;;  %v353_v57 = vmul.f32 %v968_v1, %v254_v43  ;;  %v354_v58 = vmul.f32 %v968_v1, %v255_v44  ;;  %v275_v46 = vld [vmem:[%s961_s10 + $0x280] sm:$0xff]  ;;  %v276_v47 = vld [vmem:[%s961_s10 + $0x288] sm:$0xff] }
  0x62   : > { %544 = vst [vmem:[%s1002_s24 + $0x1a8] sm:$0xff] %v446_v48  ;;  %v355_v59 = vmul.f32 %v968_v1, %v256_v45  ;;  %545 = vst [vmem:[%s1002_s24 + $0x1b0] sm:$0xff] %v447_v51  ;;  %v449_v63 = vadd.f32 %v973_v5, %v350_v52  ;;  %v450_v0 = vadd.f32 %v973_v5, %v351_v53  ;;  %v277_v48 = vld [vmem:[%s961_s10 + $0x290] sm:$0xff]  ;;  %v278_v53 = vld [vmem:[%s961_s10 + $0x298] sm:$0xff] }
  0x63   : > { %v451_v2 = vadd.f32 %v973_v5, %v352_v54  ;;  %v356_v3 = vmul.f32 %v968_v1, %v257_v50  ;;  %546 = vst [vmem:[%s1002_s24 + $0x1b8] sm:$0xff] %v448_v56  ;;  %v452_v8 = vadd.f32 %v973_v5, %v353_v57  ;;  %v453_v9 = vadd.f32 %v973_v5, %v354_v58  ;;  %v279_v54 = vld [vmem:[%s961_s10 + $0x2a0] sm:$0xff] }
  0x64   : > { %v454_v10 = vadd.f32 %v973_v5, %v355_v59  ;;  %v357_v11 = vmul.f32 %v968_v1, %v258_v55  ;;  %547 = vst [vmem:[%s1002_s24 + $0x1c0] sm:$0xff] %v449_v63  ;;  %548 = vst [vmem:[%s1002_s24 + $0x1c8] sm:$0xff] %v450_v0  ;;  %v358_v14 = vmul.f32 %v968_v1, %v259_v60  ;;  %v280_v55 = vld [vmem:[%s961_s10 + $0x2a8] sm:$0xff]  ;;  %v281_v60 = vld [vmem:[%s961_s10 + $0x2b0] sm:$0xff] }
  0x65   : > { %549 = vst [vmem:[%s1002_s24 + $0x1d0] sm:$0xff] %v451_v2  ;;  %v455_v13 = vadd.f32 %v973_v5, %v356_v3  ;;  %v359_v15 = vmul.f32 %v968_v1, %v260_v61  ;;  %v360_v16 = vmul.f32 %v968_v1, %v261_v62  ;;  %550 = vst [vmem:[%s1002_s24 + $0x1d8] sm:$0xff] %v452_v8  ;;  %v282_v2 = vld [vmem:[%s961_s10 + $0x2b8] sm:$0xff]  ;;  %v283_v8 = vld [vmem:[%s961_s10 + $0x2c0] sm:$0xff] }
  0x66   : > { %551 = vst [vmem:[%s1002_s24 + $0x1e0] sm:$0xff] %v453_v9  ;;  %552 = vst [vmem:[%s1002_s24 + $0x1e8] sm:$0xff] %v454_v10  ;;  %v456_v18 = vadd.f32 %v973_v5, %v357_v11  ;;  %v361_v19 = vmul.f32 %v968_v1, %v262_v4  ;;  %v362_v20 = vmul.f32 %v968_v1, %v263_v6  ;;  %v284_v9 = vld [vmem:[%s961_s10 + $0x2c8] sm:$0xff]  ;;  %v285_v10 = vld [vmem:[%s961_s10 + $0x2d0] sm:$0xff] }
  0x67   : > { %v363_v21 = vmul.f32 %v968_v1, %v264_v7  ;;  %553 = vst [vmem:[%s1002_s24 + $0x1f0] sm:$0xff] %v455_v13  ;;  %v457_v25 = vadd.f32 %v973_v5, %v358_v14  ;;  %v458_v26 = vadd.f32 %v973_v5, %v359_v15  ;;  %v459_v27 = vadd.f32 %v973_v5, %v360_v16  ;;  %v286_v15 = vld [vmem:[%s961_s10 + $0x2d8] sm:$0xff]  ;;  %v287_v16 = vld [vmem:[%s961_s10 + $0x2e0] sm:$0xff] }
  0x68   : > { %v364_v28 = vmul.f32 %v968_v1, %v265_v12  ;;  %554 = vst [vmem:[%s1002_s24 + $0x1f8] sm:$0xff] %v456_v18  ;;  %v460_v32 = vadd.f32 %v973_v5, %v361_v19  ;;  %v461_v33 = vadd.f32 %v973_v5, %v362_v20  ;;  %v365_v35 = vmul.f32 %v968_v1, %v266_v17  ;;  %v288_v17 = vld [vmem:[%s961_s10 + $0x2e8] sm:$0xff] }
  0x69   : > { %v462_v34 = vadd.f32 %v973_v5, %v363_v21  ;;  %555 = vst [vmem:[%s1002_s24 + $0x200] sm:$0xff] %v457_v25  ;;  %556 = vst [vmem:[%s1002_s24 + $0x208] sm:$0xff] %v458_v26  ;;  %v366_v38 = vmul.f32 %v968_v1, %v267_v22  ;;  %v367_v39 = vmul.f32 %v968_v1, %v268_v23  ;;  %v289_v22 = vld [vmem:[%s961_s10 + $0x2f0] sm:$0xff] }
  0x6a   : > { %557 = vst [vmem:[%s1002_s24 + $0x210] sm:$0xff] %v459_v27  ;;  %v463_v37 = vadd.f32 %v973_v5, %v364_v28  ;;  %v368_v40 = vmul.f32 %v968_v1, %v269_v24  ;;  %558 = vst [vmem:[%s1002_s24 + $0x218] sm:$0xff] %v460_v32  ;;  %v464_v42 = vadd.f32 %v973_v5, %v365_v35  ;;  %v290_v27 = vld [vmem:[%s961_s10 + $0x2f8] sm:$0xff]  ;;  %v291_v32 = vld [vmem:[%s961_s10 + $0x300] sm:$0xff] }
  0x6b   : > { %559 = vst [vmem:[%s1002_s24 + $0x220] sm:$0xff] %v461_v33  ;;  %560 = vst [vmem:[%s1002_s24 + $0x228] sm:$0xff] %v462_v34  ;;  %v369_v43 = vmul.f32 %v968_v1, %v270_v29  ;;  %v370_v44 = vmul.f32 %v968_v1, %v271_v30  ;;  %v371_v45 = vmul.f32 %v968_v1, %v272_v31  ;;  %v292_v33 = vld [vmem:[%s961_s10 + $0x308] sm:$0xff] }
  0x6c   : > { %561 = vst [vmem:[%s1002_s24 + $0x230] sm:$0xff] %v463_v37  ;;  %v465_v49 = vadd.f32 %v973_v5, %v366_v38  ;;  %v466_v50 = vadd.f32 %v973_v5, %v367_v39  ;;  %v467_v51 = vadd.f32 %v973_v5, %v368_v40  ;;  %v372_v52 = vmul.f32 %v968_v1, %v273_v36 }
  0x6d   : > { %562 = vst [vmem:[%s1002_s24 + $0x238] sm:$0xff] %v464_v42  ;;  %v468_v56 = vadd.f32 %v973_v5, %v369_v43  ;;  %v469_v57 = vadd.f32 %v973_v5, %v370_v44  ;;  %v470_v58 = vadd.f32 %v973_v5, %v371_v45  ;;  %v373_v59 = vmul.f32 %v968_v1, %v274_v41 }
  0x6e   : > { %563 = vst [vmem:[%s1002_s24 + $0x240] sm:$0xff] %v465_v49  ;;  %564 = vst [vmem:[%s1002_s24 + $0x248] sm:$0xff] %v466_v50  ;;  %v471_v61 = vadd.f32 %v973_v5, %v372_v52  ;;  %v374_v62 = vmul.f32 %v968_v1, %v275_v46  ;;  %v375_v63 = vmul.f32 %v968_v1, %v276_v47 }
  0x6f   : > { %565 = vst [vmem:[%s1002_s24 + $0x250] sm:$0xff] %v467_v51  ;;  %v376_v0 = vmul.f32 %v968_v1, %v277_v48  ;;  %566 = vst [vmem:[%s1002_s24 + $0x258] sm:$0xff] %v468_v56  ;;  %v472_v3 = vadd.f32 %v973_v5, %v373_v59  ;;  %v377_v4 = vmul.f32 %v968_v1, %v278_v53 }
  0x70   : > { %567 = vst [vmem:[%s1002_s24 + $0x260] sm:$0xff] %v469_v57  ;;  %568 = vst [vmem:[%s1002_s24 + $0x268] sm:$0xff] %v470_v58  ;;  %v378_v6 = vmul.f32 %v968_v1, %v279_v54  ;;  %v379_v7 = vmul.f32 %v968_v1, %v280_v55  ;;  %v473_v11 = vadd.f32 %v973_v5, %v374_v62 }
  0x71   : > { %569 = vst [vmem:[%s1002_s24 + $0x270] sm:$0xff] %v471_v61  ;;  %v474_v12 = vadd.f32 %v973_v5, %v375_v63  ;;  %v475_v13 = vadd.f32 %v973_v5, %v376_v0  ;;  %v380_v14 = vmul.f32 %v968_v1, %v281_v60  ;;  %570 = vst [vmem:[%s1002_s24 + $0x278] sm:$0xff] %v472_v3 }
  0x72   : > { %v476_v18 = vadd.f32 %v973_v5, %v377_v4  ;;  %v477_v19 = vadd.f32 %v973_v5, %v378_v6  ;;  %v478_v20 = vadd.f32 %v973_v5, %v379_v7  ;;  %v381_v21 = vmul.f32 %v968_v1, %v282_v2  ;;  %571 = vst [vmem:[%s1002_s24 + $0x280] sm:$0xff] %v473_v11 }
  0x73   : > { %572 = vst [vmem:[%s1002_s24 + $0x288] sm:$0xff] %v474_v12  ;;  %573 = vst [vmem:[%s1002_s24 + $0x290] sm:$0xff] %v475_v13  ;;  %v479_v23 = vadd.f32 %v973_v5, %v380_v14  ;;  %v382_v24 = vmul.f32 %v968_v1, %v283_v8  ;;  %v383_v25 = vmul.f32 %v968_v1, %v284_v9 }
  0x74   : > { %v384_v26 = vmul.f32 %v968_v1, %v285_v10  ;;  %574 = vst [vmem:[%s1002_s24 + $0x298] sm:$0xff] %v476_v18  ;;  %575 = vst [vmem:[%s1002_s24 + $0x2a0] sm:$0xff] %v477_v19  ;;  %v480_v28 = vadd.f32 %v973_v5, %v381_v21  ;;  %v385_v29 = vmul.f32 %v968_v1, %v286_v15 }
  0x75   : > { %576 = vst [vmem:[%s1002_s24 + $0x2a8] sm:$0xff] %v478_v20  ;;  %v386_v30 = vmul.f32 %v968_v1, %v287_v16  ;;  %v387_v31 = vmul.f32 %v968_v1, %v288_v17  ;;  %577 = vst [vmem:[%s1002_s24 + $0x2b0] sm:$0xff] %v479_v23  ;;  %v481_v34 = vadd.f32 %v973_v5, %v382_v24 }
  0x76   : > { %v482_v35 = vadd.f32 %v973_v5, %v383_v25  ;;  %v483_v36 = vadd.f32 %v973_v5, %v384_v26  ;;  %v388_v37 = vmul.f32 %v968_v1, %v289_v22  ;;  %578 = vst [vmem:[%s1002_s24 + $0x2b8] sm:$0xff] %v480_v28  ;;  %v484_v38 = vadd.f32 %v973_v5, %v385_v29 }
  0x77   : > { %v485_v39 = vadd.f32 %v973_v5, %v386_v30  ;;  %v486_v40 = vadd.f32 %v973_v5, %v387_v31  ;;  %v389_v41 = vmul.f32 %v968_v1, %v290_v27  ;;  %579 = vst [vmem:[%s1002_s24 + $0x2c0] sm:$0xff] %v481_v34  ;;  %v390_v43 = vmul.f32 %v968_v1, %v291_v32 }
  0x78   : > { %580 = vst [vmem:[%s1002_s24 + $0x2c8] sm:$0xff] %v482_v35  ;;  %581 = vst [vmem:[%s1002_s24 + $0x2d0] sm:$0xff] %v483_v36  ;;  %v487_v42 = vadd.f32 %v973_v5, %v388_v37  ;;  %v391_v44 = vmul.f32 %v968_v1, %v292_v33 }
  0x79   : > { %582 = vst [vmem:[%s1002_s24 + $0x2d8] sm:$0xff] %v484_v38  ;;  %583 = vst [vmem:[%s1002_s24 + $0x2e0] sm:$0xff] %v485_v39  ;;  %v488_v45 = vadd.f32 %v973_v5, %v389_v41  ;;  %v489_v46 = vadd.f32 %v973_v5, %v390_v43 }
  0x7a   : > { %584 = vst [vmem:[%s1002_s24 + $0x2e8] sm:$0xff] %v486_v40  ;;  %585 = vst [vmem:[%s1002_s24 + $0x2f0] sm:$0xff] %v487_v42  ;;  %v490_v1 = vadd.f32 %v973_v5, %v391_v44 }
  0x7b   : > { %586 = vst [vmem:[%s1002_s24 + $0x2f8] sm:$0xff] %v488_v45  ;;  %587 = vst [vmem:[%s1002_s24 + $0x300] sm:$0xff] %v489_v46 }
  0x7c   : > { %588 = vst [vmem:[%s1002_s24 + $0x308] sm:$0xff] %v490_v1 }
  0x7d   : > { %779 = shalt.err (!%p776_p10)
}
  0x7e   : > { %s780_s22 = scalar_lea.hbm %s1366_s12, 12544  ;;  %s784_s29 = scalar_lea.hbm %s1420_s3, 25088 }
  0x7f   : > { %p781_p0 = scmp.ne.s32.totalorder %s1366_s12, %s780_s22  ;;  %p785_p1 = scmp.lt.s32.totalorder %s1366_s12, %s1420_s3 }
  0x80   : > { %p786_p3 = scmp.lt.s32.totalorder %s784_s29, %s780_s22 }
  0x81   : > { %p782_p2 = pnand %p781_p0, %p1428_p12 }
  0x82   : > { %p787_p6 = por %p786_p3, %p785_p1 }
  0x83   : > { %p783_p9 = pneg %p782_p2 }
  0x85   : > { %p788_p11 = pnand %p787_p6, %p783_p9 }
  0x87   : > { %791 = shalt.err (!%p788_p11)
}
  0x88   : > { %s836_s10 = smov 128   ;;  %s837_s5 = smov 8  }
  0x89   : > { %690 = dma.vmem_to_hbm [thread:$0]  (%p1428_p12), %s1368_s9, 12544, %s1366_s12, %s590_s13, %s836_s10, %s836_s10, %s837_s5  }
  0x8a PF: > { %s618_s6 = sand.u32 1, %s818_s16   ;;  %p1429_p13 = scmp.ne.s32.totalorder %s1425_s26, 0 }
  0x8b   : > { %p1430_p4 = scmp.ge.s32.totalorder %s830_s19, 2  ;;  %s619_s24 = scalar_lea.sflag [#allocation6], %s618_s6 }
  0x8d   : > { %p697_p5 = pnand %p1430_p4, %p1429_p13 }
  0x8f   : > { %p698_p7 = pneg %p697_p5 }
  0x91   : > { %813 = dma.done.wait (%p698_p7), %s619_s24, 12544  }
  0x92   : > { %815 = vsyncadd (%p698_p7), %s619_s24, 4294954752  ;;  %p18_p8 = scmp.ge.s32.totalorder %s889_s20, 4   ;;  %s1431_s16 = smov %s822_s17 }
  0x93   : > { %s1432_s17 = smov %s826_s18  ;;  %s1433_s18 = smov %s901_s23 }
  0x94   : > { %s1434_s19 = smov %s889_s20  ;;  %20 = sbr.rel (!%p18_p8) target bundleno = 8 (0x8), region = 77 }
  0x99   :  { %624 = vsyncpa [#allocation5], 1 }
  0x9a   :  { %626 = vsyncpa [#allocation5 + $0x1], 1 }
  0x9b   :  { %627 = vsyncpa [#allocation6], 1 }
  0x9c   :  { %629 = vsyncpa [#allocation6 + $0x1], 1 }

</bundles_post_ra>
